<compile_context>
chip_gen: v7x
topology: tpu7x:2x2x1
jax: 0.10.0
libtpu: 0.0.40
codegen_flags: <defaults>
</compile_context>

<pallas_src>
import functools

import jax
import jax.numpy as jnp
from jax.experimental import pallas as pl
from jax.experimental.pallas import tpu as pltpu


def _smoothed_ce_kernel(*refs, eps, n_class, bb, has_weight, use_mxu, sumw_const):
    # refs (weighted):   x_ref (bb,C,T), lbl_ref (bb,1,T), wy_ref (bb,1,T),
    #                    w_ref (1,C) [use_mxu] or (C,1), out_ref (bb,1,T)
    # refs (unweighted): x_ref, lbl_ref, out_ref
    if has_weight:
        x_ref, lbl_ref, wy_ref, w_ref, out_ref = refs
    else:
        x_ref, lbl_ref, out_ref = refs
        wy_ref = None
        w_ref = None

    a = float(eps) / max(n_class - 1, 1)      # off-label smoothing mass
    b = 1.0 - float(eps) - a                  # extra on-label mass (a + b = 1 - eps)

    if has_weight:
        # sumw is baked as a Python constant when weight is concrete; the tiny
        # (C,) in-kernel reduce is only a fallback for traced weights.
        sumw = sumw_const if sumw_const is not None \
            else jnp.sum(w_ref[...].astype(jnp.float32))
    else:
        sumw = float(n_class)

    # Static unroll over the batch rows folded into this block (bb is small);
    # every op below stays a plain 2-D (C, T) / (1, T) tile op.
    for i in range(bb):
        x = x_ref[i].astype(jnp.float32)                        # (C, T)
        lbl = lbl_ref[i]                                        # (1, T) int32

        # Numerically stable log-partition over the class (sublane) axis.
        m = jnp.max(x, axis=0, keepdims=True)                   # (1, T)  XLU
        e = jnp.exp(x - m)                                      # (C, T)  EUP/VPU

        cls = jax.lax.broadcasted_iota(jnp.int32, x.shape, 0)   # (C, T)
        is_lbl = cls == lbl
        # x_{i,y_i}: one select + one cross-sublane reduce (no onehot temps).
        x_y = jnp.sum(jnp.where(is_lbl, x, 0.0), axis=0, keepdims=True)   # (1, T)

        if use_mxu:
            # Large C: run the two big class reductions on the idle MXU instead
            # of VPU-mul + XLU-sum; frees the saturating cross-lane path.
            ones_row = jnp.ones((1, n_class), jnp.float32)
            sum_e = jnp.dot(ones_row, e, preferred_element_type=jnp.float32)
            if has_weight:
                w_row = w_ref[...].astype(jnp.float32)           # (1, C)
                sum_wx = jnp.dot(w_row, x, preferred_element_type=jnp.float32)
            else:
                sum_wx = jnp.dot(ones_row, x, preferred_element_type=jnp.float32)
        else:
            sum_e = jnp.sum(e, axis=0, keepdims=True)            # (1, T)  XLU
            if has_weight:
                w_col = w_ref[...].astype(jnp.float32)           # (C, 1)
                sum_wx = jnp.sum(x * w_col, axis=0, keepdims=True)
            else:
                sum_wx = jnp.sum(x, axis=0, keepdims=True)

        logz = jnp.log(sum_e) + m                                # (1, T)

        # loss_i = -( a * sum_c w_c*logp_ic + b * w_{y_i} * logp_{i,y_i} )
        on_label = (wy_ref[i] * (x_y - logz)) if has_weight else (x_y - logz)
        out_ref[i] = -(a * (sum_wx - logz * sumw) + b * on_label)
    # TODO(synk): optional bf16 mask/select math on v6e/v7x (v5e has no bf16
    # VALU) left out to keep numerics identical to the f32 reference.


def _plan_tiling(B, C, S, itemsize):
    """Chip-aware choice of (lane tile, spatial tiles, batch fold, vmem limit, mxu).

    The lane tile is sized from the TRUE per-step working set: a 2-deep double
    buffer of the native-dtype score block plus ~4 f32 (C, t) body temporaries
    (upcast, exp, mask/select), not just one native-dtype block.
    """
    vmem_cap = 128 * 1024 * 1024
    try:
        vmem_cap = int(getattr(pltpu.get_tpu_info(), "vmem_capacity_bytes", vmem_cap))
    except Exception:
        pass
    small_vmem = vmem_cap <= 64 * 1024 * 1024             # v7x-class TensorCore
    vmem_limit = (48 if small_vmem else 64) * 1024 * 1024
    budget = vmem_limit // 2                              # headroom for compiler scratch

    bytes_per_lane = C * (2 * itemsize + 4 * 4) + 8 * 4
    lane_cap = 1024 if small_vmem else 2048               # lane sweet spot, tighter on v7x
    t_s = max(128, min(budget // bytes_per_lane, lane_cap))
    t_s = (t_s // 128) * 128
    t_s = min(t_s, ((S + 127) // 128) * 128)              # don't over-pad a tiny S
    n_s = -(-S // t_s)                                    # ceil-div; S is padded to n_s*t_s

    # Fold batch rows into the block when C is tiny, so each grid step moves
    # enough bytes to amortize DMA setup / per-step overhead -- but keep at
    # least 2 grid steps so both v7x TensorCores (megacore) stay populated.
    bb = 1
    if C * itemsize * t_s < 512 * 1024:
        for d in range(1, B + 1):
            if B % d:
                continue
            if d * bytes_per_lane * t_s > budget:
                break
            if (B // d) * n_s >= 2 or B * n_s <= 1:
                bb = d
    use_mxu = C >= 256
    # TODO(synk): vocab-scale C still uses a full-C block; replace with a
    # class-tiled grid axis + online max/log-sum-exp accumulator.
    return t_s, n_s, bb, vmem_limit, use_mxu


def smoothed_cross_entropy(output, label, weight=None, reduction="mean", eps=0.1):
    """output: (B, C, *spatial) float; label: (B, *spatial) int."""
    assert reduction in ("mean", "sum", "none")
    B, C = int(output.shape[0]), int(output.shape[1])
    spatial = tuple(int(d) for d in output.shape[2:])
    S = 1
    for d in spatial:
        S *= d

    has_weight = weight is not None
    itemsize = jnp.dtype(output.dtype).itemsize
    t_s, n_s, bb, vmem_limit, use_mxu = _plan_tiling(B, C, S, itemsize)
    S_pad = n_s * t_s

    # Free reshapes only -- the kernel consumes native NCHW (classes on the
    # sublane axis, positions on the lane axis); no HBM transpose pass.
    x3 = output.reshape(B, C, S)
    lbl3 = label.reshape(B, 1, S).astype(jnp.int32)
    if S_pad != S:
        # Pad the spatial axis up to a multiple of the lane tile; padded
        # positions are computed but sliced away before the reduction, so the
        # 'mean' divisor stays exact.
        x3 = jnp.pad(x3, ((0, 0), (0, 0), (0, S_pad - S)))
        lbl3 = jnp.pad(lbl3, ((0, 0), (0, 0), (0, S_pad - S)))

    args = [x3, lbl3]
    in_specs = [
        pl.BlockSpec((bb, C, t_s), lambda b, j: (b, 0, j)),    # scores (native dtype)
        pl.BlockSpec((bb, 1, t_s), lambda b, j: (b, 0, j)),    # labels
    ]

    sumw_const = None
    if has_weight:
        assert weight.shape == (C,)
        w_f32 = weight.astype(jnp.float32)
        # Precompute w_{y_i} as a lane-dense stream: removes one (C,T) select,
        # one (C,T) broadcast and one cross-sublane reduction from the kernel.
        wy3 = w_f32[lbl3]                                      # (B, 1, S_pad) f32
        w_arr = w_f32.reshape((1, C) if use_mxu else (C, 1))
        try:
            sumw_const = float(jnp.sum(w_f32))                 # bake when concrete
        except Exception:
            sumw_const = None                                  # traced weight: reduce in-kernel
        args += [wy3, w_arr]
        in_specs += [
            pl.BlockSpec((bb, 1, t_s), lambda b, j: (b, 0, j)),
            pl.BlockSpec(w_arr.shape, lambda b, j: (0, 0)),
        ]

    kernel = functools.partial(
        _smoothed_ce_kernel, eps=float(eps), n_class=C, bb=bb,
        has_weight=has_weight, use_mxu=use_mxu, sumw_const=sumw_const)

    per_pos = pl.pallas_call(
        kernel,
        out_shape=jax.ShapeDtypeStruct((B, 1, S_pad), jnp.float32),
        grid_spec=pltpu.PrefetchScalarGridSpec(
            num_scalar_prefetch=0,
            grid=(B // bb, n_s),
            in_specs=in_specs,
            out_specs=pl.BlockSpec((bb, 1, t_s), lambda b, j: (b, 0, j)),
        ),
        compiler_params=pltpu.CompilerParams(
            dimension_semantics=("parallel", "parallel"),
            vmem_limit_bytes=vmem_limit),
    )(*args)

    # TODO(synk): for reduction='mean'/'sum' with tiny C, accumulate the scalar
    # in SMEM scratch across an 'arbitrary' grid axis instead of round-tripping
    # the (B,1,S) f32 per-position output through HBM.
    per_elem = per_pos[:, 0, :S].reshape((B,) + spatial)       # == loss.sum(1) in torch
    if reduction == "none":
        return per_elem.astype(output.dtype)
    if reduction == "mean":
        return jnp.mean(per_elem).astype(output.dtype)
    return jnp.sum(per_elem).astype(output.dtype)


def _reference(output, label, weight=None, reduction="mean", eps=0.1):
    C = output.shape[1]
    logp = jax.nn.log_softmax(output.astype(jnp.float32), axis=1)
    onehot = jax.nn.one_hot(label, C, axis=1, dtype=jnp.float32)
    smoothed = (1.0 - eps) * onehot + (eps / (C - 1)) * (1.0 - onehot)
    loss = -logp * smoothed
    if weight is not None:
        wshape = [1, C] + [1] * (output.ndim - 2)
        loss = loss * weight.reshape(wshape)
    loss = loss.sum(axis=1)
    if reduction == "none":
        return loss
    if reduction == "mean":
        return loss.mean()
    return loss.sum()


if __name__ == "__main__":
    key = jax.random.PRNGKey(0)
    kx, kl = jax.random.split(key)

    # Weighted, 'mean' reduction, 128-aligned spatial extent.
    B, C, H, W = 2, 4, 16, 16
    x = jax.random.normal(kx, (B, C, H, W), jnp.float32)
    label = jax.random.randint(kl, (B, H, W), 0, C, jnp.int32)
    weight = jnp.linspace(0.5, 1.5, C, dtype=jnp.float32)

    out = smoothed_cross_entropy(x, label, weight=weight, reduction="mean", eps=0.1)
    out = jax.block_until_ready(out)
    ref = _reference(x, label, weight=weight, reduction="mean", eps=0.1)
    assert jnp.allclose(out, ref, rtol=1e-5, atol=1e-5), (out, ref)

    # Un-weighted 'none' path on a spatial extent that is NOT 128-aligned, to
    # exercise the pad-and-slice tail handling.
    H2, W2 = 9, 13
    x2 = jax.random.normal(kx, (B, C, H2, W2), jnp.float32)
    label2 = jax.random.randint(kl, (B, H2, W2), 0, C, jnp.int32)
    out_none = jax.block_until_ready(
        smoothed_cross_entropy(x2, label2, weight=None, reduction="none", eps=0.1))
    ref_none = _reference(x2, label2, weight=None, reduction="none", eps=0.1)
    assert jnp.allclose(out_none, ref_none, rtol=1e-5, atol=1e-5)

    print("KERNEL_OK")
</pallas_src>

<mosaic_0001>
module attributes {stable_mosaic.version = 11 : i64} {
  func.func @_smoothed_ce_kernel(%arg0: i32, %arg1: i32, %arg2: memref<1x4x256xf32, #tpu.memory_space<vmem>>, %arg3: memref<1x1x256xi32, #tpu.memory_space<vmem>>, %arg4: memref<1x1x256xf32, #tpu.memory_space<vmem>>, %arg5: memref<4x1xf32, #tpu.memory_space<vmem>>, %arg6: memref<1x1x256xf32, #tpu.memory_space<vmem>>) attributes {dimension_semantics = [#tpu.dimension_semantics<parallel>, #tpu.dimension_semantics<parallel>], iteration_bounds = array<i64: 2, 1>, scalar_prefetch = 0 : i64, scratch_operands = 0 : i64, tpu.core_type = #tpu.core_type<tc>, window_params = [{transform_indices = @transform_0, window_bounds = array<i64: 1, 4, 256>}, {transform_indices = @transform_1, window_bounds = array<i64: 1, 1, 256>}, {transform_indices = @transform_2, window_bounds = array<i64: 1, 1, 256>}, {pipeline_mode = #tpu.pipeline_mode<synchronous>, transform_indices = @transform_3, window_bounds = array<i64: 4, 1>}, {transform_indices = @transform_4, window_bounds = array<i64: 1, 1, 256>}]} {
    %c0 = arith.constant 0 : index
    %c0_0 = arith.constant 0 : index
    %c0_1 = arith.constant 0 : index
    %0 = vector.load %arg2[%c0, %c0_0, %c0_1] : memref<1x4x256xf32, #tpu.memory_space<vmem>>, vector<1x4x256xf32>
    %1 = vector.shape_cast %0 : vector<1x4x256xf32> to vector<4x256xf32>
    %c0_2 = arith.constant 0 : index
    %c0_3 = arith.constant 0 : index
    %c0_4 = arith.constant 0 : index
    %2 = vector.load %arg3[%c0_2, %c0_3, %c0_4] : memref<1x1x256xi32, #tpu.memory_space<vmem>>, vector<1x1x256xi32>
    %3 = vector.shape_cast %2 : vector<1x1x256xi32> to vector<1x256xi32>
    %cst = arith.constant dense<0xFF800000> : vector<256xf32>
    %4 = vector.multi_reduction <maximumf>, %1, %cst [0] : vector<4x256xf32> to vector<256xf32>
    %5 = vector.shape_cast %4 : vector<256xf32> to vector<1x256xf32>
    %6 = vector.broadcast %5 : vector<1x256xf32> to vector<4x256xf32>
    %7 = arith.subf %1, %6 : vector<4x256xf32>
    %8 = math.exp %7 : vector<4x256xf32>
    %9 = tpu.iota {dimensions = array<i32: 0>} : vector<4x256xi32>
    %10 = vector.broadcast %3 : vector<1x256xi32> to vector<4x256xi32>
    %11 = arith.cmpi eq, %9, %10 : vector<4x256xi32>
    %cst_5 = arith.constant 0.000000e+00 : f32
    %12 = vector.broadcast %cst_5 : f32 to vector<4x256xf32>
    %13 = arith.select %11, %1, %12 : vector<4x256xi1>, vector<4x256xf32>
    %cst_6 = arith.constant dense<0.000000e+00> : vector<256xf32>
    %14 = vector.multi_reduction <add>, %13, %cst_6 [0] : vector<4x256xf32> to vector<256xf32>
    %15 = vector.shape_cast %14 : vector<256xf32> to vector<1x256xf32>
    %cst_7 = arith.constant dense<0.000000e+00> : vector<256xf32>
    %16 = vector.multi_reduction <add>, %8, %cst_7 [0] : vector<4x256xf32> to vector<256xf32>
    %17 = vector.shape_cast %16 : vector<256xf32> to vector<1x256xf32>
    %c0_8 = arith.constant 0 : index
    %c0_9 = arith.constant 0 : index
    %18 = vector.load %arg5[%c0_8, %c0_9] : memref<4x1xf32, #tpu.memory_space<vmem>>, vector<4x1xf32>
    %19 = vector.broadcast %18 : vector<4x1xf32> to vector<4x256xf32>
    %20 = arith.mulf %1, %19 : vector<4x256xf32>
    %cst_10 = arith.constant dense<0.000000e+00> : vector<256xf32>
    %21 = vector.multi_reduction <add>, %20, %cst_10 [0] : vector<4x256xf32> to vector<256xf32>
    %22 = vector.shape_cast %21 : vector<256xf32> to vector<1x256xf32>
    %23 = math.log %17 : vector<1x256xf32>
    %24 = arith.addf %23, %5 : vector<1x256xf32>
    %c0_11 = arith.constant 0 : index
    %c0_12 = arith.constant 0 : index
    %c0_13 = arith.constant 0 : index
    %25 = vector.load %arg4[%c0_11, %c0_12, %c0_13] : memref<1x1x256xf32, #tpu.memory_space<vmem>>, vector<1x1x256xf32>
    %26 = vector.shape_cast %25 : vector<1x1x256xf32> to vector<1x256xf32>
    %27 = arith.subf %15, %24 : vector<1x256xf32>
    %28 = arith.mulf %26, %27 : vector<1x256xf32>
    %cst_14 = arith.constant 4.000000e+00 : f32
    %29 = vector.broadcast %cst_14 : f32 to vector<1x256xf32>
    %30 = arith.mulf %24, %29 : vector<1x256xf32>
    %31 = arith.subf %22, %30 : vector<1x256xf32>
    %cst_15 = arith.constant 0.0333333351 : f32
    %32 = vector.broadcast %cst_15 : f32 to vector<1x256xf32>
    %33 = arith.mulf %32, %31 : vector<1x256xf32>
    %cst_16 = arith.constant 0.866666674 : f32
    %34 = vector.broadcast %cst_16 : f32 to vector<1x256xf32>
    %35 = arith.mulf %34, %28 : vector<1x256xf32>
    %36 = arith.addf %33, %35 : vector<1x256xf32>
    %cst_17 = arith.constant 0.000000e+00 : f32
    %37 = vector.broadcast %cst_17 : f32 to vector<1x256xf32>
    %38 = arith.subf %37, %36 : vector<1x256xf32>
    %c0_18 = arith.constant 0 : index
    %c0_19 = arith.constant 0 : index
    %c0_20 = arith.constant 0 : index
    %39 = vector.load %arg6[%c0_18, %c0_19, %c0_20] : memref<1x1x256xf32, #tpu.memory_space<vmem>>, vector<1x1x256xf32>
    %40 = vector.shape_cast %39 : vector<1x1x256xf32> to vector<1x256xf32>
    %41 = vector.shape_cast %38 : vector<1x256xf32> to vector<1x1x256xf32>
    tpu.vector_store %arg6[%c0_18, %c0_19, %c0_20], %41 {strides = array<i32>} : memref<1x1x256xf32, #tpu.memory_space<vmem>>, vector<1x1x256xf32>,
    return
  }
  func.func @transform_0(%arg0: i32, %arg1: i32) -> (i32, i32, i32) {
    %c0_i32 = arith.constant 0 : i32
    %c0_i32_0 = arith.constant 0 : i32
    return %arg0, %c0_i32, %arg1 : i32, i32, i32
  }
  func.func @transform_1(%arg0: i32, %arg1: i32) -> (i32, i32, i32) {
    %c0_i32 = arith.constant 0 : i32
    %c0_i32_0 = arith.constant 0 : i32
    return %arg0, %c0_i32, %arg1 : i32, i32, i32
  }
  func.func @transform_2(%arg0: i32, %arg1: i32) -> (i32, i32, i32) {
    %c0_i32 = arith.constant 0 : i32
    %c0_i32_0 = arith.constant 0 : i32
    return %arg0, %c0_i32, %arg1 : i32, i32, i32
  }
  func.func @transform_3(%arg0: i32, %arg1: i32) -> (i32, i32) {
    %c0_i32 = arith.constant 0 : i32
    %c0_i32_0 = arith.constant 0 : i32
    %c0_i32_1 = arith.constant 0 : i32
    return %c0_i32, %c0_i32_0 : i32, i32
  }
  func.func @transform_4(%arg0: i32, %arg1: i32) -> (i32, i32, i32) {
    %c0_i32 = arith.constant 0 : i32
    %c0_i32_0 = arith.constant 0 : i32
    return %arg0, %c0_i32, %arg1 : i32, i32, i32
  }
}

</mosaic_0001>

<bundles_post_ra>
// kernel: tpu_custom_call.1
= control target key start
LH: loop header
LB: loop body
LE: loop exit
PB: predicated region body
PF: predicated region fallthrough
CT: control target
= control target key end

     0   :  { %s1365_s0 = inlined_call_operand.hbm [shape: f32[2,4,256], index: 0, kind: input, shape index: {}]   ;;  %s1366_s1 = inlined_call_operand.hbm [shape: s32[2,1,256], index: 1, kind: input, shape index: {}]   ;;  %s1367_s2 = inlined_call_operand.hbm [shape: f32[2,1,256], index: 2, kind: input, shape index: {}]   ;;  %s1368_s3 = inlined_call_operand.hbm [shape: f32[4,1], index: 3, kind: input, shape index: {}]   ;;  %s1369_s4 = inlined_call_operand.hbm [shape: f32[2,1,256], index: 4, kind: output, shape index: {}]  }
   0x1   :  { %1388 = sst [smem:[#allocation22_spill]] %s1366_s1 }
   0x2   :  { %1389 = sst [smem:[#allocation23_spill]] %s1369_s4 }
   0x3   :  { %9 = vsyncpa [#allocation3], 0 }
   0x4   :  { %11 = vsyncpa [#allocation3 + $0x1], 0 }
   0x5   :  { %12 = vsyncpa [#allocation6], 0 }
   0x6   :  { %14 = vsyncpa [#allocation6 + $0x1], 0 }
   0x7   :  { %15 = vsyncpa [#allocation9], 0 }
   0x8   :  { %16 = vsyncpa [#allocation4], 0 }
   0x9   :  { %18 = vsyncpa [#allocation4 + $0x1], 0  ;;  %s1032_s15 = smov 0   ;;  %s1034_s16 = smov 0  }
   0xa   :  { %s1036_s17 = smov 0   ;;  %s1038_s18 = smov 0  }
   0xb   :  { %s1040_s19 = smov 0   ;;  %s1042_s20 = smov 0  }
   0xc LB: > { %1390 = sst [smem:[#allocation15_spill]] %s977_s15  ;;  %s36_s21 = sadd.s32 1, %s993_s19  ;;  %s997_s20 = sphi %s1042_s20, %s24_s20   ;;  %s993_s19 = sphi %s1040_s19, %s1424_s19   ;;  %s989_s18 = sphi %s1038_s18, %s1423_s18   ;;  %s985_s17 = sphi %s1036_s17, %s1422_s17   ;;  %s981_s16 = sphi %s1034_s16, %s1426_s16   ;;  %s977_s15 = sphi %s1032_s15, %s1425_s15  }
   0xd   : > { %1391 = sst [smem:[#allocation16_spill]] %s985_s17  ;;  %s45_s22 = sadd.s32 1, %s985_s17 }
   0xe   : > { %1392 = sst [smem:[#allocation17_spill]] %s993_s19  ;;  %p38_p0 = scmp.ge.s32.totalorder %s36_s21, 2 }
   0xf   : > { %1393 = sst [smem:[#allocation18_spill]] %s997_s20  ;;  %p1370_p1 = scmp.ne.s32.totalorder %s985_s17, %s981_s16 }
  0x10   : > { %p53_p2 = scmp.eq.s32.totalorder %s997_s20, 0  ;;  %s1428_s21 = smov (%p38_p0, %s36_s21), 0 }
  0x11   : > { %1394 = sst [smem:[#allocation19_spill]] %s1428_s21  ;;  %p726_p5 = scmp.lt.s32.totalorder %s997_s20, 2 }
  0x12   : > { %p54_p4 = por %p53_p2, %p1370_p1  ;;  %s40_s23 = ssub.s32 %s993_s19, %s1428_s21 }
  0x13   : > { %s1077_s24 = sand.u32 1, %s985_s17   ;;  %p43_p6 = scmp.eq.s32.totalorder %s40_s23, 0 }
  0x14   : > { %p1079_p7 = pnand %p726_p5, %p54_p4  ;;  %s219_s26 = sand.u32 1, %s997_s20  }
  0x15   : > { %s1371_s27 = sshll.u32 %s1077_s24, 1  ;;  %s692_s29 = sshll.u32 %s993_s19, 5 }
  0x16   : > { %s1395_s25 = scalar_select %p1079_p7, 1, 0 }
  0x17   : > { %s1086_s28 = scalar_select %p43_p6, %s985_s17, %s45_s22  }
  0x18   : > { %s1397_s1 = sld [smem:[#allocation22_spill]]  ;;  %s223_s7 = scalar_lea.vmem [#allocation5], %s1371_s27 }
  0x19   : > { %1396 = sst [smem:[#allocation20_spill]] %s1086_s28  ;;  %s233_s8 = sshll.u32 %s223_s7, 4  ;;  %s1098_s8 = int_to_ptr.vmem [resolvable:$true] %s233_s8 }
  0x1a   : > { %s1100_s9 = scalar_lea.sflag [#allocation6], %s219_s26  ;;  %p1106_p9 = pneg %p1079_p7 }
  0x1c   : > { %s1398_s11 = scalar_select %p1106_p9, 1, 0 }
  0x1e   : > { %s1094_s6 = scalar_lea.hbm %s1397_s1, %s692_s29  ;;  %s794_s14 = scalar_lea.hbm %s1397_s1, 64 }
  0x1f   : > { %s789_s10 = scalar_lea.hbm %s1094_s6, 32  ;;  %p795_p12 = scmp.lt.u32.totalorder %s1094_s6, %s1397_s1 }
  0x20   : > { %p790_p8 = scmp.ne.s32.totalorder %s1094_s6, %s789_s10  ;;  %p796_p13 = scmp.lt.u32.totalorder %s794_s14, %s789_s10 }
  0x21   : > { %p798_p2 = scmp.lt.u32.totalorder %s789_s10, %s1094_s6 }
  0x22   : > { %p792_p10 = pnand %p1106_p9, %p790_p8  ;;  %p797_p0 = por %p796_p13, %p795_p12 }
  0x24   : > { %p793_p11 = pneg %p792_p10  ;;  %p799_p4 = por %p798_p2, %p797_p0 }
  0x26   : > { %p800_p5 = pnand %p799_p4, %p793_p11 }
  0x28   : > { %803 = shalt.err (!%p800_p5)
}
  0x29   : > { %s804_s26 = scalar_lea.vmem %s1098_s8, 32  ;;  %s999_s30 = smov [#allocation5]  }
  0x2a   : > { %p805_p6 = scmp.ne.s32.totalorder %s1098_s8, %s804_s26  ;;  %s809_s5 = sshll.u32 %s999_s30, 4  ;;  %s810_s5 = int_to_ptr.vmem [resolvable:$false] %s809_s5 }
  0x2b   : > { %s811_s7 = scalar_lea.vmem %s810_s5, 64  ;;  %p812_p3 = scmp.lt.s32.totalorder %s1098_s8, %s810_s5 }
  0x2c   : > { %p807_p8 = pnand %p805_p6, %p1106_p9  ;;  %p813_p1 = scmp.lt.s32.totalorder %s811_s7, %s804_s26 }
  0x2e   : > { %p808_p10 = pneg %p807_p8  ;;  %p814_p12 = por %p813_p1, %p812_p3 }
  0x30   : > { %p815_p13 = pnand %p814_p12, %p808_p10 }
  0x32   : > { %818 = shalt.err (!%p815_p13)
}
  0x33   : > { %717 = dma.hbm_to_vmem [thread:$0]  (!%p1079_p7), %s1094_s6, 32, %s1098_s8, %s1100_s9  }
  0x34   : > { %s1135_s13 = scalar_lea.hbm %s1367_s2, %s692_s29  ;;  %s1138_s14 = sadd.s32 4294967295, %s997_s20  }
  0x35   : > { %s667_s22 = sadd.s32 4294967294, %s997_s20   ;;  %p58_p1 = scmp.ne.s32.totalorder %s981_s16, %s977_s15 }
  0x36   : > { %p1380_p3 = scmp.eq.s32.totalorder %s1138_s14, 0  ;;  %p161_p11 = scmp.eq.s32.totalorder %s1138_s14, 1 }
  0x37   : > { %p167_p0 = scmp.eq.s32.totalorder %s667_s22, 1  ;;  %p668_p2 = scmp.ge.s32.totalorder %s997_s20, 1 }
  0x38   : > { %p1148_p4 = por %p1380_p3, %p58_p1  ;;  %p1400_p5 = scmp.ne.s32.totalorder %s985_s17, %s981_s16 }
  0x39   : > { %p1159_p8 = por %p167_p0, %p58_p1  ;;  %p174_p10 = scmp.lt.s32.totalorder %s997_s20, 3 }
  0x3a   : > { %s1399_s6 = scalar_select %p1148_p4, 1, 0 }
  0x3b   : > { %p1155_p6 = por %p161_p11, %p1400_p5  ;;  %p1164_p12 = pnand %p668_p2, %p174_p10 }
  0x3c   : > { %s1402_s8 = scalar_select %p1159_p8, 1, 0 }
  0x3d   : > { %s1401_s29 = scalar_select %p1155_p6, 1, 0 }
  0x3e   : > { %1403 = sst [smem:[#allocation21_spill]] %s1402_s8  ;;  %s1000_s26 = smov [#allocation8]  }
  0x3f   : > { %s1404_s23 = scalar_select %p1164_p12, 1, 0 }
  0x40   : > { %s187_s30 = sshll.u32 %s1000_s26, 4  ;;  %p707_p13 = pneg %p1164_p12  ;;  %s188_s30 = int_to_ptr.vmem [resolvable:$true] %s187_s30 }
  0x41   : > { %s671_s5 = sshll.u32 %s1077_s24, 3  ;;  %s691_s7 = sshll.u32 %s993_s19, 7 }
  0x42   : > { %p1174_p11 = pnand %p707_p13, %p1380_p3  ;;  %s1181_s27 = scalar_lea.hbm %s1365_s0, %s691_s7 }
  0x43   : > { %s202_s1 = scalar_lea.vmem [#allocation2], %s671_s5  ;;  %s1406_s28 = sshll.u32 %s1077_s24, 1 }
  0x44   : > { %s212_s21 = sshll.u32 %s202_s1, 4  ;;  %s1185_s26 = scalar_lea.vmem [#allocation7], %s1406_s28  ;;  %s1188_s21 = int_to_ptr.vmem [resolvable:$true] %s212_s21 }
  0x45   : > { %s254_s17 = sshll.u32 %s1185_s26, 4  ;;  %s819_s8 = scalar_lea.hbm %s1368_s3, 64  ;;  %s255_s17 = int_to_ptr.vmem [resolvable:$true] %s254_s17 }
  0x46   : > { %p820_p1 = scmp.ne.s32.totalorder %s1368_s3, %s819_s8  ;;  %p821_p0 = pneg %p1174_p11 }
  0x47   : > { %p826_p10 = scmp.lt.u32.totalorder %s819_s8, %s1368_s3 }
  0x48   : > { %p822_p2 = pnand %p821_p0, %p820_p1 }
  0x4a   : > { %p823_p5 = pneg %p822_p2 }
  0x4c   : > { %p828_p13 = pnand %p826_p10, %p823_p5 }
  0x4e   : > { %831 = shalt.err (!%p828_p13)
}
  0x4f   : > { %s832_s28 = scalar_lea.vmem %s188_s30, 64  ;;  %p840_p4 = scmp.lt.s32.totalorder %s188_s30, %s188_s30 }
  0x50   : > { %p833_p3 = scmp.ne.s32.totalorder %s188_s30, %s832_s28  ;;  %p841_p12 = scmp.lt.s32.totalorder %s832_s28, %s832_s28 }
  0x52   : > { %p835_p8 = pnand %p833_p3, %p821_p0  ;;  %p842_p7 = por %p841_p12, %p840_p4 }
  0x54   : > { %p836_p6 = pneg %p835_p8 }
  0x56   : > { %p843_p9 = pnand %p842_p7, %p836_p6 }
  0x58   : > { %846 = shalt.err (!%p843_p9)
}
  0x59   : > { %710 = dma.hbm_to_vmem [thread:$0]  (!%p1174_p11), %s1368_s3, 64, %s188_s30, [#allocation9]  }
  0x5a   : > { %s199_s19 = scalar_lea.sflag [#allocation3], %s1077_s24  ;;  %s847_s20 = scalar_lea.hbm %s1181_s27, 128 }
  0x5b   : > { %p848_p3 = scmp.ne.s32.totalorder %s1181_s27, %s847_s20  ;;  %p1407_p8 = scmp.ne.s32.totalorder %s1398_s11, 0 }
  0x5c   : > { %s852_s10 = scalar_lea.hbm %s1365_s0, 256  ;;  %p853_p7 = scmp.lt.u32.totalorder %s1181_s27, %s1365_s0 }
  0x5d   : > { %p850_p1 = pnand %p848_p3, %p1407_p8  ;;  %p854_p9 = scmp.lt.u32.totalorder %s852_s10, %s847_s20 }
  0x5e   : > { %p856_p12 = scmp.lt.u32.totalorder %s847_s20, %s1181_s27 }
  0x5f   : > { %p851_p4 = pneg %p850_p1  ;;  %p855_p6 = por %p854_p9, %p853_p7 }
  0x61   : > { %p857_p0 = por %p856_p12, %p855_p6 }
  0x63   : > { %p858_p2 = pnand %p857_p0, %p851_p4 }
  0x65   : > { %861 = shalt.err (!%p858_p2)
}
  0x66   : > { %s862_s24 = scalar_lea.vmem %s1188_s21, 128  ;;  %s1001_s30 = smov [#allocation2]  }
  0x67   : > { %p863_p11 = scmp.ne.s32.totalorder %s1188_s21, %s862_s24  ;;  %s867_s1 = sshll.u32 %s1001_s30, 4  ;;  %s868_s1 = int_to_ptr.vmem [resolvable:$false] %s867_s1 }
  0x68   : > { %s869_s5 = scalar_lea.vmem %s868_s1, 256  ;;  %p870_p13 = scmp.lt.s32.totalorder %s1188_s21, %s868_s1 }
  0x69   : > { %p865_p5 = pnand %p863_p11, %p1407_p8  ;;  %p871_p3 = scmp.lt.s32.totalorder %s869_s5, %s862_s24 }
  0x6b   : > { %p866_p10 = pneg %p865_p5  ;;  %p872_p1 = por %p871_p3, %p870_p13 }
  0x6d   : > { %p873_p7 = pnand %p872_p1, %p866_p10 }
  0x6f   : > { %876 = shalt.err (!%p873_p7)
}
  0x70   : > { %p1408_p4 = scmp.ne.s32.totalorder %s1395_s25, 0  ;;  %s877_s28 = scalar_lea.hbm %s1135_s13, 32 }
  0x71   : > { %p878_p9 = scmp.ne.s32.totalorder %s1135_s13, %s877_s28  ;;  %s882_s20 = scalar_lea.hbm %s1367_s2, 64 }
  0x72   : > { %714 = dma.hbm_to_vmem [thread:$0]  (!%p1408_p4), %s1181_s27, 128, %s1188_s21, %s199_s19  }
  0x73   : > { %p880_p6 = pnand %p878_p9, %p1407_p8  ;;  %p883_p0 = scmp.lt.u32.totalorder %s1135_s13, %s1367_s2 }
  0x74   : > { %p884_p2 = scmp.lt.u32.totalorder %s882_s20, %s877_s28  ;;  %p886_p5 = scmp.lt.u32.totalorder %s877_s28, %s1135_s13 }
  0x75   : > { %p881_p12 = pneg %p880_p6 }
  0x76   : > { %p885_p11 = por %p884_p2, %p883_p0 }
  0x78   : > { %p887_p10 = por %p886_p5, %p885_p11 }
  0x7a   : > { %p888_p13 = pnand %p887_p10, %p881_p12 }
  0x7c   : > { %891 = shalt.err (!%p888_p13)
}
  0x7d   : > { %s892_s21 = scalar_lea.vmem %s255_s17, 32  ;;  %s1002_s27 = smov [#allocation7]  }
  0x7e   : > { %p893_p3 = scmp.ne.s32.totalorder %s255_s17, %s892_s21  ;;  %s897_s26 = sshll.u32 %s1002_s27, 4  ;;  %s898_s26 = int_to_ptr.vmem [resolvable:$false] %s897_s26 }
  0x7f   : > { %s899_s19 = scalar_lea.vmem %s898_s26, 64  ;;  %p900_p9 = scmp.lt.s32.totalorder %s255_s17, %s898_s26 }
  0x80   : > { %p895_p1 = pnand %p893_p3, %p1407_p8  ;;  %p901_p6 = scmp.lt.s32.totalorder %s899_s19, %s892_s21 }
  0x82   : > { %p896_p7 = pneg %p895_p1  ;;  %p902_p4 = por %p901_p6, %p900_p9 }
  0x84   : > { %p903_p0 = pnand %p902_p4, %p896_p7 }
  0x86   : > { %906 = shalt.err (!%p903_p0)
}
  0x87   : > { %p1409_p2 = scmp.ne.s32.totalorder %s1395_s25, 0  ;;  %p1410_p12 = scmp.ne.s32.totalorder %s1404_s23, 0 }
  0x88   : > { %s1251_s11 = sand.u32 (!%p1410_p12), 1, %s981_s16   ;;  %p1411_p8 = scmp.ne.s32.totalorder (!%p1410_p12), %s1399_s6, 0 }
  0x89   : > { %720 = dma.hbm_to_vmem [thread:$0]  (!%p1409_p2), %s1135_s13, 32, %s255_s17, %s1100_s9  }
  0x8a   : > { %263 = sbr.rel (%p1410_p12) target bundleno = 329 (0x149), region = 36  ;;  %s681_s10 = sshll.u32 (!%p1410_p12), %s1251_s11, 3 }
  0x8b   : > { %s266_s12 = scalar_lea.sflag (!%p1410_p12), [#allocation3], %s1251_s11  ;;  %s269_s22 = scalar_lea.vmem (!%p1410_p12), [#allocation2], %s681_s10 }
  0x91   : > { %960 = dma.done.wait (%p1411_p8), %s266_s12, 128  }
  0x92   : > { %962 = vsyncadd (%p1411_p8), %s266_s12, 4294967168  ;;  %s274_s17 = sand.u32 1, %s1138_s14   ;;  %s1261_s25 = sshll.u32 %s1251_s11, 1 }
  0x93   : > { %s275_s9 = scalar_lea.sflag [#allocation6], %s274_s17  ;;  %s278_s13 = scalar_lea.vmem [#allocation5], %s1261_s25 }
  0x94   : > { %964 = dma.done.wait (%p1411_p8), %s275_s9, 64  }
  0x95   : > { %966 = vsyncadd (%p1411_p8), %s275_s9, 4294967232  ;;  %s287_s23 = scalar_lea.vmem [#allocation7], %s1261_s25  ;;  %p1412_p4 = scmp.eq.s32.totalorder %s1138_s14, 0 }
  0x97   : > { %968 = dma.done.wait (%p1412_p4), [#allocation9], 64   ;;  %p1413_p11 = pmov %p1412_p4 }
  0x98   : > { %v1003_v0 = vmov 0   ;;  %v402_v1 = vld [vmem:[#allocation8] sm:$0xf]  ;;  %v1273_v2 = vld [vmem:[%s269_s22] sm:$0xff]  ;;  %vm335_vm0 = vcmask 1043456   ;;  %v357_v23 = vlaneseq  ;;  %s694_s14 = sshll.u32 %s989_s18, 5 }
  0x99   : > { %970 = vsyncadd (%p1413_p11), [#allocation9], 4294967232  ;;  %781 = vset.pattern.permute.xlu0 %v1003_v0  ;;  %v333_v3 = vcombine.high %v1273_v2, %v1273_v2  ;;  %v336_v4 = vsel %vm335_vm0, %v1273_v2, -inf  ;;  %v331_v33 = vld [vmem:[%s278_s13] sm:$0x3]  ;;  %s325_s6 = scalar_lea.vmem [#allocation10], %s1261_s25 }
  0x9a   : > { %405 = vperm.xlu0 %781, %v402_v1   ;;  %v337_v6 = vrot.slane %v336_v4, 4  ;;  %v1284_v27 = vshrl.u32 %v357_v23, 7  ;;  %v1004_v62 = vmov 839922192   ;;  %v1005_v0 = vmov 1966171168  }
  0x9b   : > { %v343_v5 = vsel %vm335_vm0, %v333_v3, -inf  ;;  %v408_v63 = vunpack.c.l.s4 %v1004_v62  ;;  %v446_v1 = vunpack.c.l.s4 %v1005_v0  ;;  %s523_s24 = sshll.u32 %s325_s6, 4  ;;  %vm503_vm3 = vcmp.lt.s32.totalorder %v357_v23, 256  ;;  %s1414_s5 = sld [smem:[#allocation23_spill]]  ;;  %s1318_s24 = int_to_ptr.vmem [resolvable:$true] %s523_s24 }
  0x9c   : > { %v344_v7 = vrot.slane %v343_v5, 4  ;;  %v338_v8 = vmax.f32 %v336_v4, %v337_v6  ;;  %v361_v30 = vsub.s32 0, %v1284_v27  ;;  %v365_v31 = vsub.s32 1, %v1284_v27  ;;  %s507_s4 = scalar_lea.sflag [#allocation4], %s1251_s11  ;;  %s907_s15 = scalar_lea.vmem %s1318_s24, 32 }
  0x9d   : > { %p908_p5 = scmp.ne.s32.totalorder %s1318_s24, %s907_s15  ;;  %p1415_p10 = scmp.ne.s32.totalorder %s1401_s29, 0 }
  0x9e   : > { %v345_v9 = vmax.f32 %v343_v5, %v344_v7  ;;  %v339_v10 = vrot.slane %v338_v8, 2  ;;  %v362_v35 = vrot.slane %v331_v33, %v361_v30  ;;  %v366_v36 = vrot.slane %v331_v33, %v365_v31  ;;  %s1006_s18 = smov [#allocation10]  }
  0x9f   : > { %v409_v7 = vunpack.c.0.s8 %v408_v63  ;;  %p909_p13 = pnand %p908_p5, %p1415_p10  ;;  %s911_s20 = sshll.u32 %s1006_s18, 4  ;;  %s912_s20 = int_to_ptr.vmem [resolvable:$false] %s911_s20 }
  0xa0   : > { %v346_v11 = vrot.slane %v345_v9, 2  ;;  %v340_v12 = vmax.f32 %v338_v8, %v339_v10  ;;  %vm367_vm1 = vcmp.eq.s32.totalorder %v1284_v27, %v362_v35  ;;  %vm368_vm2 = vcmp.eq.s32.totalorder %v1284_v27, %v366_v36  ;;  %s913_s8 = scalar_lea.vmem %s912_s20, 64  ;;  %p914_p1 = scmp.lt.s32.totalorder %s1318_s24, %s912_s20 }
  0xa1   : > { %v369_v40 = vsel %vm367_vm1, %v1273_v2, 0.0  ;;  %v370_v41 = vsel %vm368_vm2, %v333_v3, 0.0  ;;  %v447_v8 = vunpack.c.0.s8 %v446_v1  ;;  %s1316_s28 = scalar_lea.hbm %s1414_s5, %s694_s14  ;;  %p910_p3 = pneg %p909_p13 }
  0xa2   : > { %v347_v13 = vmax.f32 %v345_v9, %v346_v11  ;;  %v341_v14 = vrot.slane %v340_v12, 1  ;;  %v371_v44 = vsel %vm335_vm0, %v369_v40, 0.0  ;;  %v378_v45 = vsel %vm335_vm0, %v370_v41, 0.0  ;;  %p915_p7 = scmp.lt.s32.totalorder %s913_s8, %s907_s15 }
  0xa3   : > { %v372_v48 = vrot.slane %v371_v44, 4  ;;  %v379_v49 = vrot.slane %v378_v45, 4  ;;  %v412_v11 = vsub.s32 %v409_v7, %v1284_v27 }
  0xa4   : > { %v348_v15 = vrot.slane %v347_v13, 1  ;;  %v342_v16 = vmax.f32 %v340_v12, %v341_v14  ;;  %v450_v12 = vsub.s32 %v447_v8, %v1284_v27  ;;  %p916_p9 = por %p915_p7, %p914_p1 }
  0xa5   : > { %v373_v50 = vadd.f32 %v372_v48, %v371_v44  ;;  %v380_v51 = vadd.f32 %v379_v49, %v378_v45 }
  0xa6   : > { %v349_v17 = vmax.f32 %v347_v13, %v348_v15  ;;  %p917_p6 = pnand %p916_p9, %p910_p3 }
  0xa7   : > { %v374_v52 = vrot.slane %v373_v50, 2  ;;  %v381_v53 = vrot.slane %v380_v51, 2 }
  0xa8   : > { %v352_v18 = vcombine.low %v342_v16, %v349_v17 }
  0xa9   : > { %v375_v55 = vadd.f32 %v374_v52, %v373_v50  ;;  %v382_v56 = vadd.f32 %v381_v53, %v380_v51 }
  0xaa   : > { %v354_v19 = vsub.f32 %v1273_v2, %v352_v18 }
  0xab   : > { %v376_v58 = vrot.slane %v375_v55, 1  ;;  %v383_v59 = vrot.slane %v382_v56, 1 }
  0xac   : > { %v355_v20 = vmul.f32 1.442695, %v354_v19 }
  0xad   : > { %v377_v3 = vadd.f32 %v376_v58, %v375_v55  ;;  %v384_v4 = vadd.f32 %v383_v59, %v382_v56 }
  0xae   : > { %783 = vpow2.f32 %v355_v20 }
  0xb8   : > { %v784_v21 = vpop.eup %783 }
  0xb9   : > { %v386_v22 = vcombine.high %v784_v21, %v784_v21  ;;  %v388_v24 = vsel %vm335_vm0, %v784_v21, 0.0 }
  0xba   : > { %v389_v26 = vrot.slane %v388_v24, 4 }
  0xbb   : > { %v395_v25 = vsel %vm335_vm0, %v386_v22, 0.0  ;;  %v439_v22 = vld [vmem:[%s287_s23] sm:$0x3] }
  0xbc   : > { %v396_v28 = vrot.slane %v395_v25, 4  ;;  %v390_v29 = vadd.f32 %v389_v26, %v388_v24 }
  0xbe   : > { %v397_v32 = vadd.f32 %v396_v28, %v395_v25  ;;  %v391_v34 = vrot.slane %v390_v29, 2 }
  0xc0   : > { %v398_v37 = vrot.slane %v397_v32, 2  ;;  %v392_v38 = vadd.f32 %v391_v34, %v390_v29 }
  0xc2   : > { %v399_v39 = vadd.f32 %v398_v37, %v397_v32  ;;  %v393_v42 = vrot.slane %v392_v38, 1 }
  0xc4   : > { %v400_v43 = vrot.slane %v399_v39, 1  ;;  %v394_v46 = vadd.f32 %v393_v42, %v392_v38 }
  0xc6   : > { %v401_v47 = vadd.f32 %v400_v43, %v399_v39  ;;  %785 = vlog2.f32 %v394_v46 }
  0xc8   : > { %787 = vlog2.f32 %v401_v47 }
  0xd0   : > { %v786_v54 = vpop.eup %785 }
  0xd1   : > { %v434_v60 = vmul.f32 0.6931472, %v786_v54 }
  0xd2   : > { %v788_v57 = vpop.eup %787 }
  0xd3   : > { %v436_v61 = vmul.f32 0.6931472, %v788_v57  ;;  %v437_v5 = vadd.f32 %v434_v60, %v342_v16 }
  0xd5   : > { %v438_v6 = vadd.f32 %v436_v61, %v349_v17  ;;  %v440_v9 = vsub.f32 %v377_v3, %v437_v5  ;;  %v461_v37 = vmul.f32 4.0, %v437_v5 }
  0xd7   : > { %v441_v10 = vsub.f32 %v384_v4, %v438_v6  ;;  %v462_v40 = vmul.f32 4.0, %v438_v6 }
  0xd9   : > { %v444_v13 = vcombine.low %v440_v9, %v441_v10 }
  0xdb   : > { %v451_v18 = vrot.slane %v444_v13, %v450_v12 }
  0xdd   : > { %v458_v17 = vrot.slane %v451_v18, %v450_v12 }
  0xdf   : > { %v460_v32 = vmul.f32 %v458_v17, %v439_v22 }
 0x119   : > { %v406_v14 = vpop.permute.xlu0 %405 }
 0x11a   : > { %v413_v15 = vrot.slane %v406_v14, %v412_v11 }
 0x11c   : > { %v415_v19 = vmul.f32 %v413_v15, %v1273_v2  ;;  %v467_v2 = vmul.f32 0.8666667, %v460_v32 }
 0x11e   : > { %v417_v20 = vcombine.high %v415_v19, %v415_v19  ;;  %v419_v21 = vsel %vm335_vm0, %v415_v19, 0.0  ;;  %v472_v43 = vrot.slane %v467_v2, %v361_v30  ;;  %v476_v46 = vrot.slane %v467_v2, %v365_v31 }
 0x11f   : > { %v420_v16 = vrot.slane %v419_v21, 4 }
 0x120   : > { %v426_v24 = vsel %vm335_vm0, %v417_v20, 0.0 }
 0x121   : > { %v421_v25 = vadd.f32 %v420_v16, %v419_v21  ;;  %v427_v26 = vrot.slane %v426_v24, 4 }
 0x123   : > { %v422_v28 = vrot.slane %v421_v25, 2  ;;  %v428_v29 = vadd.f32 %v427_v26, %v426_v24 }
 0x125   : > { %v423_v33 = vadd.f32 %v422_v28, %v421_v25  ;;  %v429_v34 = vrot.slane %v428_v29, 2 }
 0x127   : > { %v424_v35 = vrot.slane %v423_v33, 1  ;;  %v430_v36 = vadd.f32 %v429_v34, %v428_v29 }
 0x129   : > { %v425_v38 = vadd.f32 %v424_v35, %v423_v33  ;;  %v431_v39 = vrot.slane %v430_v36, 1 }
 0x12b   : > { %v432_v41 = vadd.f32 %v431_v39, %v430_v36  ;;  %v463_v42 = vsub.f32 %v425_v38, %v461_v37 }
 0x12d   : > { %v464_v44 = vsub.f32 %v432_v41, %v462_v40  ;;  %v465_v45 = vmul.f32 0.033333335, %v463_v42 }
 0x12f   : > { %v466_v47 = vmul.f32 0.033333335, %v464_v44  ;;  %v479_v48 = vadd.f32 %v472_v43, %v465_v45 }
 0x131   : > { %v480_v49 = vadd.f32 %v476_v46, %v466_v47  ;;  %v481_v50 = vsub.f32 0.0, %v479_v48 }
 0x133   : > { %v482_v51 = vsub.f32 0.0, %v480_v49 }
 0x135   : > { %v485_v52 = vcombine.low %v481_v50, %v482_v51 }
 0x137   : > { %v492_v53 = vrot.slane %v485_v52, %v450_v12 }
 0x139   : > { %v499_v30 = vrot.slane %v492_v53, %v450_v12 }
 0x13b   : > { %505 = vst.msk [vmem:[%s325_s6] sm:$0x3] %vm503_vm3, %v499_v30 }
 0x13c   : > { %920 = shalt.err (!%p917_p6)
}
 0x13d   : > { %s921_s7 = scalar_lea.hbm %s1316_s28, 32  ;;  %s925_s26 = scalar_lea.hbm %s1414_s5, 64 }
 0x13e   : > { %p922_p0 = scmp.ne.s32.totalorder %s1316_s28, %s921_s7  ;;  %p926_p8 = scmp.lt.u32.totalorder %s1316_s28, %s1414_s5 }
 0x13f   : > { %p927_p4 = scmp.lt.u32.totalorder %s925_s26, %s921_s7  ;;  %p929_p5 = scmp.lt.u32.totalorder %s921_s7, %s1316_s28 }
 0x140   : > { %p923_p2 = pnand %p922_p0, %p1415_p10 }
 0x141   : > { %p928_p11 = por %p927_p4, %p926_p8 }
 0x142   : > { %p924_p12 = pneg %p923_p2 }
 0x143   : > { %p930_p13 = por %p929_p5, %p928_p11 }
 0x145   : > { %p931_p3 = pnand %p930_p13, %p924_p12 }
 0x147   : > { %934 = shalt.err (!%p931_p3)
}
 0x148   : > { %705 = dma.vmem_to_hbm [thread:$0]  (%p1415_p10), %s1318_s24, 32, %s1316_s28, %s507_s4  }
 0x149 PF: > { %s1416_s10 = sld [smem:[#allocation15_spill]]  ;;  %s1417_s12 = sld [smem:[#allocation21_spill]] }
 0x14a   : > { %s1418_s22 = sld [smem:[#allocation18_spill]] }
 0x14f   : > { %s535_s17 = sand.u32 1, %s1416_s10   ;;  %p1419_p1 = scmp.ne.s32.totalorder %s1417_s12, 0 }
 0x150   : > { %p1420_p7 = scmp.ge.s32.totalorder %s1418_s22, 2  ;;  %s536_s25 = scalar_lea.sflag [#allocation4], %s535_s17 }
 0x152   : > { %p722_p9 = pnand %p1420_p7, %p1419_p1 }
 0x154   : > { %972 = dma.done.wait (!%p722_p9), %s536_s25, 32  }
 0x155   : > { %974 = vsyncadd (!%p722_p9), %s536_s25, 4294967264  ;;  %s24_s20 = sadd.s32 1, %s1418_s22   ;;  %s1421_s9 = sld [smem:[#allocation16_spill]] }
 0x156   : > { %p21_p6 = scmp.ge.s32.totalorder %s24_s20, 4   ;;  %s1422_s17 = sld [smem:[#allocation20_spill]] }
 0x157   : > { %s1423_s18 = sld [smem:[#allocation17_spill]]  ;;  %s1424_s19 = sld [smem:[#allocation19_spill]] }
 0x158   : > { %s1425_s15 = smov %s981_s16  ;;  %23 = sbr.rel (!%p21_p6) target bundleno = 12 (0xc), region = 109 }
 0x15b   : > { %s1426_s16 = smov %s1421_s9 }
 0x15f   :  { %541 = vsyncpa [#allocation3], 1 }
 0x160   :  { %543 = vsyncpa [#allocation3 + $0x1], 1 }
 0x161   :  { %544 = vsyncpa [#allocation6], 1 }
 0x162   :  { %546 = vsyncpa [#allocation6 + $0x1], 1 }
 0x163   :  { %547 = vsyncpa [#allocation9], 1 }
 0x164   :  { %548 = vsyncpa [#allocation4], 1 }
 0x165   :  { %550 = vsyncpa [#allocation4 + $0x1], 1 }

</bundles_post_ra>
